<compile_context>
chip_gen: v7x
topology: tpu7x:2x2x1
jax: 0.10.0
libtpu: 0.0.40
codegen_flags: <defaults>
</compile_context>

<pallas_src>
import math

import jax
import jax.numpy as jnp
import numpy as np
from jax import lax
from jax.experimental import pallas as pl
from jax.experimental.pallas import tpu as pltpu


def _round_up(x, m):
    return ((x + m - 1) // m) * m


def _largest_divisor_leq(n, cap):
    best = 1
    for d in range(1, n + 1):
        if n % d == 0 and d <= cap:
            best = d
    return best


def _vmem_limit_bytes():
    """Scoped-VMEM limit to request, derived from the chip's physical VMEM."""
    try:
        phys = int(pltpu.get_tpu_info().vmem_capacity_bytes)
    except Exception:
        phys = 64 << 20                      # conservative: v7x has the least
    return max(32 << 20, (phys * 3) // 4)    # 48 MiB on v7x, 96 MiB on v5e/v6e


def channel_se_layer(x, w1, b1, w2, b2):
    """Squeeze-and-excitation forward.

    x:  (N, C, H, W)    w1: (Cr, C)  b1: (Cr,)   w2: (C, Cr)  b2: (C,)
    Returns (N, C, H, W) = x * sigmoid(fc2(relu(fc1(mean_hw(x))))) per channel.
    """
    N, C, H, W = x.shape
    HW = H * W
    Cr = w1.shape[0]
    dtype = x.dtype
    itemsize = jnp.dtype(dtype).itemsize

    x_flat = x.reshape(N, C, HW)             # contiguous reshape -> free in XLA
    # Tiny weights: keep MLP math in f32 regardless of activation dtype.
    # NOTE: assumes the weights fit VMEM as resident blocks (true for any sane C).
    w1f = w1.astype(jnp.float32)
    w2f = w2.astype(jnp.float32)
    b1_2d = b1.reshape(1, Cr).astype(jnp.float32)
    b2_2d = b2.reshape(1, C).astype(jnp.float32)
    inv_hw = 1.0 / float(HW)                  # mean uses the TRUE spatial size

    vmem_limit = _vmem_limit_bytes()
    # Per-block budget: 2 in-bufs + 2 out-bufs (+ an f32 temp for sub-32-bit x).
    buf_factor = 6 if itemsize >= 4 else 8
    fused_cap = vmem_limit // buf_factor
    per_batch_bytes = C * HW * itemsize

    # ------------------------------------------------------------------ fused
    if per_batch_bytes <= fused_cap:
        cap_tn = max(1, fused_cap // per_batch_bytes)
        if N >= 2:
            # keep >= 2 grid steps so both v7x TensorCores have parallel work
            cap_tn = min(cap_tn, max(1, N // 2))
        tn = _largest_divisor_leq(N, cap_tn)   # always divides N exactly

        def fused_kernel(x_ref, w1_ref, b1_ref, w2_ref, b2_ref, o_ref):
            xf = x_ref[...].astype(jnp.float32)                   # (tn, C, HW)
            s = jnp.sum(xf, axis=2) * inv_hw                      # (tn, C) mean
            # s @ w1.T + b1  (contract dim 1 with dim 1 -> no transpose copy)
            z1 = lax.dot_general(s, w1_ref[...], (((1,), (1,)), ((), ())),
                                 preferred_element_type=jnp.float32)
            z1 = jnp.maximum(z1 + b1_ref[...], 0.0)               # ReLU
            z2 = lax.dot_general(z1, w2_ref[...], (((1,), (1,)), ((), ())),
                                 preferred_element_type=jnp.float32)
            gate = jax.nn.sigmoid(z2 + b2_ref[...])               # (tn, C) f32
            o_ref[...] = (xf * gate[:, :, None]).astype(o_ref.dtype)

        out_flat = pl.pallas_call(
            fused_kernel,
            out_shape=jax.ShapeDtypeStruct((N, C, HW), dtype),
            grid_spec=pltpu.PrefetchScalarGridSpec(
                num_scalar_prefetch=0,
                grid=(N // tn,),
                in_specs=[
                    pl.BlockSpec((tn, C, HW), lambda i: (i, 0, 0)),
                    pl.BlockSpec((Cr, C), lambda i: (0, 0)),    # resident
                    pl.BlockSpec((1, Cr), lambda i: (0, 0)),    # resident
                    pl.BlockSpec((C, Cr), lambda i: (0, 0)),    # resident
                    pl.BlockSpec((1, C), lambda i: (0, 0)),     # resident
                ],
                out_specs=pl.BlockSpec((tn, C, HW), lambda i: (i, 0, 0)),
            ),
            compiler_params=pltpu.CompilerParams(
                dimension_semantics=("parallel",),
                vmem_limit_bytes=vmem_limit,
            ),
        )(x_flat, w1f, b1_2d, w2f, b2_2d)
        return out_flat.reshape(N, C, H, W)

    # --------------------------------------------------- two-pass fallback
    tn = 1
    block_budget = vmem_limit // 6                   # ~8 MiB v7x, ~16 MiB v6e
    row_bytes = tn * C * itemsize
    hw128 = _round_up(HW, 128)
    cap_lanes = max(128, ((block_budget // max(1, row_bytes)) // 128) * 128)
    thw = min(cap_lanes, hw128)                      # lane-dense, no divisibility req
    grid_hw = pl.cdiv(HW, thw)
    grid = (N // tn, grid_hw)

    # pass 1: squeeze (spatial mean) + excitation MLP -> per-channel gate (f32)
    def squeeze_gate_kernel(x_ref, w1_ref, b1_ref, w2_ref, b2_ref,
                            gate_ref, acc_ref):
        k = pl.program_id(1)

        @pl.when(k == 0)
        def _():
            acc_ref[...] = jnp.zeros_like(acc_ref)

        # Mask columns past the true HW: the last tile may overrun the array
        # and out-of-bounds input values are unspecified.
        col = k * thw + lax.broadcasted_iota(jnp.int32, x_ref.shape, 2)
        xv = jnp.where(col < HW, x_ref[...].astype(jnp.float32), 0.0)
        acc_ref[...] += jnp.sum(xv, axis=2)

        @pl.when(k == pl.num_programs(1) - 1)
        def _():
            s = acc_ref[...] * inv_hw                             # (tn, C) mean
            z1 = lax.dot_general(s, w1_ref[...], (((1,), (1,)), ((), ())),
                                 preferred_element_type=jnp.float32)
            z1 = jnp.maximum(z1 + b1_ref[...], 0.0)
            z2 = lax.dot_general(z1, w2_ref[...], (((1,), (1,)), ((), ())),
                                 preferred_element_type=jnp.float32)
            gate_ref[...] = jax.nn.sigmoid(z2 + b2_ref[...])[:, :, None]

    gate = pl.pallas_call(
        squeeze_gate_kernel,
        out_shape=jax.ShapeDtypeStruct((N, C, 1), jnp.float32),
        grid_spec=pltpu.PrefetchScalarGridSpec(
            num_scalar_prefetch=0,
            grid=grid,                                   # reduction axis last
            in_specs=[
                pl.BlockSpec((tn, C, thw), lambda i, k: (i, 0, k)),
                pl.BlockSpec((Cr, C), lambda i, k: (0, 0)),   # resident
                pl.BlockSpec((1, Cr), lambda i, k: (0, 0)),   # resident
                pl.BlockSpec((C, Cr), lambda i, k: (0, 0)),   # resident
                pl.BlockSpec((1, C), lambda i, k: (0, 0)),    # resident
            ],
            out_specs=pl.BlockSpec((tn, C, 1), lambda i, k: (i, 0, 0)),
            scratch_shapes=[pltpu.VMEM((tn, C), jnp.float32)],
        ),
        compiler_params=pltpu.CompilerParams(
            dimension_semantics=("parallel", "arbitrary"),
            vmem_limit_bytes=vmem_limit,
        ),
    )(x_flat, w1f, b1_2d, w2f, b2_2d)

    # pass 2: pure streaming channel re-weighting (gate stays f32 for precision;
    # out-of-bounds lanes of the last tile are dropped on store by Pallas).
    def scale_kernel(x_ref, gate_ref, o_ref):
        o_ref[...] = (x_ref[...] * gate_ref[...]).astype(o_ref.dtype)

    out_flat = pl.pallas_call(
        scale_kernel,
        out_shape=jax.ShapeDtypeStruct((N, C, HW), dtype),
        grid_spec=pltpu.PrefetchScalarGridSpec(
            num_scalar_prefetch=0,
            grid=grid,
            in_specs=[
                pl.BlockSpec((tn, C, thw), lambda i, k: (i, 0, k)),
                pl.BlockSpec((tn, C, 1), lambda i, k: (i, 0, 0)),
            ],
            out_specs=pl.BlockSpec((tn, C, thw), lambda i, k: (i, 0, k)),
        ),
        compiler_params=pltpu.CompilerParams(
            dimension_semantics=("parallel", "parallel"),
            vmem_limit_bytes=vmem_limit,
        ),
    )(x_flat, gate)

    return out_flat.reshape(N, C, H, W)


def init_params(key, num_channels, reduction_ratio=2):
    """Deterministic init mimicking nn.Linear default (uniform +/- 1/sqrt(fan_in))."""
    num_channels_reduced = num_channels // reduction_ratio
    k1, k2, k3, k4 = jax.random.split(key, 4)
    bound1 = 1.0 / math.sqrt(num_channels)
    w1 = jax.random.uniform(k1, (num_channels_reduced, num_channels),
                            jnp.float32, -bound1, bound1)
    b1 = jax.random.uniform(k2, (num_channels_reduced,), jnp.float32, -bound1, bound1)
    bound2 = 1.0 / math.sqrt(num_channels_reduced)
    w2 = jax.random.uniform(k3, (num_channels, num_channels_reduced),
                            jnp.float32, -bound2, bound2)
    b2 = jax.random.uniform(k4, (num_channels,), jnp.float32, -bound2, bound2)
    return w1, b1, w2, b2


def reference(x, w1, b1, w2, b2):
    N, C, H, W = x.shape
    s = x.reshape(N, C, -1).mean(axis=2)
    z1 = jnp.maximum(s @ w1.T + b1, 0.0)
    z2 = jax.nn.sigmoid(z1 @ w2.T + b2)
    return x * z2[:, :, None, None]


if __name__ == "__main__":
    key = jax.random.PRNGKey(0)
    kx, kp = jax.random.split(key)

    N, C, H, W = 2, 4, 16, 16
    x = jax.random.normal(kx, (N, C, H, W), jnp.float32)
    w1, b1, w2, b2 = init_params(kp, C, reduction_ratio=2)

    out = channel_se_layer(x, w1, b1, w2, b2)
    out = jax.block_until_ready(out)

    ref = reference(x, w1, b1, w2, b2)
    np.testing.assert_allclose(np.asarray(out), np.asarray(ref), rtol=1e-5, atol=1e-5)

    print("KERNEL_OK")
</pallas_src>

<mosaic_0001>
module attributes {stable_mosaic.version = 11 : i64} {
  func.func @fused_kernel(%arg0: i32, %arg1: memref<1x4x256xf32, #tpu.memory_space<vmem>>, %arg2: memref<2x4xf32, #tpu.memory_space<vmem>>, %arg3: memref<1x2xf32, #tpu.memory_space<vmem>>, %arg4: memref<4x2xf32, #tpu.memory_space<vmem>>, %arg5: memref<1x4xf32, #tpu.memory_space<vmem>>, %arg6: memref<1x4x256xf32, #tpu.memory_space<vmem>>) attributes {dimension_semantics = [#tpu.dimension_semantics<parallel>], iteration_bounds = array<i64: 2>, scalar_prefetch = 0 : i64, scratch_operands = 0 : i64, tpu.core_type = #tpu.core_type<tc>, window_params = [{transform_indices = @transform_0, window_bounds = array<i64: 1, 4, 256>}, {pipeline_mode = #tpu.pipeline_mode<synchronous>, transform_indices = @transform_1, window_bounds = array<i64: 2, 4>}, {pipeline_mode = #tpu.pipeline_mode<synchronous>, transform_indices = @transform_2, window_bounds = array<i64: 1, 2>}, {pipeline_mode = #tpu.pipeline_mode<synchronous>, transform_indices = @transform_3, window_bounds = array<i64: 4, 2>}, {pipeline_mode = #tpu.pipeline_mode<synchronous>, transform_indices = @transform_4, window_bounds = array<i64: 1, 4>}, {transform_indices = @transform_5, window_bounds = array<i64: 1, 4, 256>}]} {
    %c0 = arith.constant 0 : index
    %c0_0 = arith.constant 0 : index
    %c0_1 = arith.constant 0 : index
    %0 = vector.load %arg1[%c0, %c0_0, %c0_1] : memref<1x4x256xf32, #tpu.memory_space<vmem>>, vector<1x4x256xf32>
    %cst = arith.constant dense<0.000000e+00> : vector<1x4xf32>
    %1 = vector.multi_reduction <add>, %0, %cst [2] : vector<1x4x256xf32> to vector<1x4xf32>
    %cst_2 = arith.constant 3.906250e-03 : f32
    %2 = vector.broadcast %cst_2 : f32 to vector<1x4xf32>
    %3 = arith.mulf %1, %2 : vector<1x4xf32>
    %c0_3 = arith.constant 0 : index
    %c0_4 = arith.constant 0 : index
    %4 = vector.load %arg2[%c0_3, %c0_4] : memref<2x4xf32, #tpu.memory_space<vmem>>, vector<2x4xf32>
    %cst_5 = arith.constant dense<0.000000e+00> : vector<1x2xf32>
    %5 = tpu.matmul %3, %4, %cst_5 {dimension_numbers = #tpu.dot_dimension_numbers<[1], [1], [0], [0], [0, 0, 1, 0], [], []>} : vector<1x4xf32>, vector<2x4xf32>, vector<1x2xf32> -> vector<1x2xf32>
    %c0_6 = arith.constant 0 : index
    %c0_7 = arith.constant 0 : index
    %6 = vector.load %arg3[%c0_6, %c0_7] : memref<1x2xf32, #tpu.memory_space<vmem>>, vector<1x2xf32>
    %7 = arith.addf %5, %6 : vector<1x2xf32>
    %cst_8 = arith.constant 0.000000e+00 : f32
    %8 = vector.broadcast %cst_8 : f32 to vector<1x2xf32>
    %9 = arith.maximumf %7, %8 : vector<1x2xf32>
    %c0_9 = arith.constant 0 : index
    %c0_10 = arith.constant 0 : index
    %10 = vector.load %arg4[%c0_9, %c0_10] : memref<4x2xf32, #tpu.memory_space<vmem>>, vector<4x2xf32>
    %cst_11 = arith.constant dense<0.000000e+00> : vector<1x4xf32>
    %11 = tpu.matmul %9, %10, %cst_11 {dimension_numbers = #tpu.dot_dimension_numbers<[1], [1], [0], [0], [0, 0, 1, 0], [], []>} : vector<1x2xf32>, vector<4x2xf32>, vector<1x4xf32> -> vector<1x4xf32>
    %c0_12 = arith.constant 0 : index
    %c0_13 = arith.constant 0 : index
    %12 = vector.load %arg5[%c0_12, %c0_13] : memref<1x4xf32, #tpu.memory_space<vmem>>, vector<1x4xf32>
    %13 = arith.addf %11, %12 : vector<1x4xf32>
    %14 = arith.negf %13 : vector<1x4xf32>
    %15 = math.exp %14 : vector<1x4xf32>
    %cst_14 = arith.constant 1.000000e+00 : f32
    %16 = vector.broadcast %cst_14 : f32 to vector<1x4xf32>
    %17 = arith.addf %16, %15 : vector<1x4xf32>
    %18 = arith.divf %16, %17 : vector<1x4xf32>
    %19 = vector.shape_cast %18 : vector<1x4xf32> to vector<1x4x1xf32>
    %20 = vector.broadcast %19 : vector<1x4x1xf32> to vector<1x4x256xf32>
    %21 = arith.mulf %0, %20 : vector<1x4x256xf32>
    %c0_15 = arith.constant 0 : index
    %c0_16 = arith.constant 0 : index
    %c0_17 = arith.constant 0 : index
    %22 = vector.load %arg6[%c0_15, %c0_16, %c0_17] : memref<1x4x256xf32, #tpu.memory_space<vmem>>, vector<1x4x256xf32>
    tpu.vector_store %arg6[%c0_15, %c0_16, %c0_17], %21 {strides = array<i32>} : memref<1x4x256xf32, #tpu.memory_space<vmem>>, vector<1x4x256xf32>,
    return
  }
  func.func @transform_0(%arg0: i32) -> (i32, i32, i32) {
    %c0_i32 = arith.constant 0 : i32
    %c0_i32_0 = arith.constant 0 : i32
    %c0_i32_1 = arith.constant 0 : i32
    return %arg0, %c0_i32, %c0_i32_0 : i32, i32, i32
  }
  func.func @transform_1(%arg0: i32) -> (i32, i32) {
    %c0_i32 = arith.constant 0 : i32
    %c0_i32_0 = arith.constant 0 : i32
    %c0_i32_1 = arith.constant 0 : i32
    return %c0_i32, %c0_i32_0 : i32, i32
  }
  func.func @transform_2(%arg0: i32) -> (i32, i32) {
    %c0_i32 = arith.constant 0 : i32
    %c0_i32_0 = arith.constant 0 : i32
    %c0_i32_1 = arith.constant 0 : i32
    return %c0_i32, %c0_i32_0 : i32, i32
  }
  func.func @transform_3(%arg0: i32) -> (i32, i32) {
    %c0_i32 = arith.constant 0 : i32
    %c0_i32_0 = arith.constant 0 : i32
    %c0_i32_1 = arith.constant 0 : i32
    return %c0_i32, %c0_i32_0 : i32, i32
  }
  func.func @transform_4(%arg0: i32) -> (i32, i32) {
    %c0_i32 = arith.constant 0 : i32
    %c0_i32_0 = arith.constant 0 : i32
    %c0_i32_1 = arith.constant 0 : i32
    return %c0_i32, %c0_i32_0 : i32, i32
  }
  func.func @transform_5(%arg0: i32) -> (i32, i32, i32) {
    %c0_i32 = arith.constant 0 : i32
    %c0_i32_0 = arith.constant 0 : i32
    %c0_i32_1 = arith.constant 0 : i32
    return %arg0, %c0_i32, %c0_i32_0 : i32, i32, i32
  }
}

</mosaic_0001>

<bundles_post_ra>
// kernel: tpu_custom_call.1
= control target key start
LH: loop header
LB: loop body
LE: loop exit
PB: predicated region body
PF: predicated region fallthrough
CT: control target
= control target key end

     0   :  { %10 = vsyncpa [#allocation3], 0  ;;  %s925_s0 = inlined_call_operand.hbm [shape: f32[2,4,256], index: 0, kind: input, shape index: {}]   ;;  %s926_s1 = inlined_call_operand.vmem [shape: f32[2,4], index: 1, kind: input, shape index: {}]   ;;  %s927_s2 = inlined_call_operand.vmem [shape: f32[1,2], index: 2, kind: input, shape index: {}]   ;;  %s928_s3 = inlined_call_operand.vmem [shape: f32[4,2], index: 3, kind: input, shape index: {}]   ;;  %s929_s4 = inlined_call_operand.vmem [shape: f32[1,4], index: 4, kind: input, shape index: {}]   ;;  %s930_s5 = inlined_call_operand.hbm [shape: f32[2,4,256], index: 5, kind: output, shape index: {}]  }
   0x1   :  { %12 = vsyncpa [#allocation3 + $0x1], 0 }
   0x2   :  { %13 = vsyncpa [#allocation4], 0 }
   0x3   :  { %15 = vsyncpa [#allocation4 + $0x1], 0  ;;  %s748_s18 = smov 0   ;;  %s750_s19 = smov 0  }
   0x4   :  { %s752_s20 = smov 0   ;;  %s754_s21 = smov 0  }
   0x5 LB: > { %s769_s22 = sadd.s32 4294967295, %s711_s21   ;;  %s526_s23 = sadd.s32 4294967294, %s711_s21   ;;  %s711_s21 = sphi %s754_s21, %s945_s21   ;;  %s707_s20 = sphi %s752_s20, %s944_s20   ;;  %s703_s19 = sphi %s750_s19, %s943_s19   ;;  %s699_s18 = sphi %s748_s18, %s942_s18  }
   0x6   : > { %s773_s24 = sadd.s32 1, %s711_s21   ;;  %s28_s25 = sadd.s32 1, %s707_s20 }
   0x7   : > { %s25_s26 = ssub.s32 %s711_s21, %s773_s24  ;;  %p35_p0 = scmp.ne.s32.totalorder %s707_s20, %s703_s19 }
   0x8   : > { %p26_p1 = scmp.eq.s32.totalorder %s25_s26, 0  ;;  %p36_p2 = scmp.eq.s32.totalorder %s711_s21, 0 }
   0x9   : > { %p41_p3 = scmp.ne.s32.totalorder %s703_s19, %s699_s18  ;;  %p42_p4 = scmp.eq.s32.totalorder %s769_s22, 0 }
   0xa   : > { %s785_s27 = scalar_select %p26_p1, %s707_s20, %s28_s25  }
   0xb   : > { %p787_p5 = por %p36_p2, %p35_p0  ;;  %p791_p6 = por %p42_p4, %p41_p3 }
   0xc   : > { %p149_p7 = scmp.eq.s32.totalorder %s769_s22, 1  ;;  %p155_p8 = scmp.eq.s32.totalorder %s526_s23, 1 }
   0xd   : > { %p573_p10 = scmp.lt.s32.totalorder %s711_s21, 2  ;;  %s187_s7 = sand.u32 1, %s707_s20  }
   0xe   : > { %p798_p11 = por %p149_p7, %p35_p0  ;;  %p802_p12 = por %p155_p8, %p41_p3 }
   0xf   : > { %s545_s8 = sshll.u32 %s711_s21, 7  ;;  %s529_s9 = sshll.u32 %s187_s7, 3 }
  0x10   : > { %s934_s30 = scalar_select %p798_p11, 1, 0 }
  0x11   : > { %s935_s6 = scalar_select %p802_p12, 1, 0 }
  0x12   : > { %s811_s12 = scalar_lea.hbm %s925_s0, %s545_s8  ;;  %s191_s13 = scalar_lea.vmem [#allocation2], %s529_s9 }
  0x13   : > { %s199_s14 = sshll.u32 %s191_s13, 4  ;;  %p815_p13 = pnand %p573_p10, %p787_p5  ;;  %s819_s14 = int_to_ptr.vmem [resolvable:$true] %s199_s14 }
  0x14   : > { %s188_s16 = scalar_lea.sflag [#allocation3], %s187_s7  ;;  %s615_s17 = scalar_lea.hbm %s811_s12, 128 }
  0x15   : > { %p616_p2 = scmp.ne.s32.totalorder %s811_s12, %s615_s17  ;;  %p617_p3 = pneg %p815_p13 }
  0x16   : > { %s620_s26 = scalar_lea.hbm %s925_s0, 256  ;;  %p621_p5 = scmp.lt.u32.totalorder %s811_s12, %s925_s0 }
  0x17   : > { %p618_p4 = pnand %p617_p3, %p616_p2  ;;  %p622_p8 = scmp.lt.u32.totalorder %s620_s26, %s615_s17 }
  0x18   : > { %p624_p9 = scmp.lt.u32.totalorder %s615_s17, %s811_s12 }
  0x19   : > { %p619_p7 = pneg %p618_p4  ;;  %p623_p10 = por %p622_p8, %p621_p5 }
  0x1b   : > { %p625_p0 = por %p624_p9, %p623_p10 }
  0x1d   : > { %p626_p1 = pnand %p625_p0, %p619_p7 }
  0x1f   : > { %629 = shalt.err (!%p626_p1)
}
  0x20   : > { %s630_s7 = scalar_lea.vmem %s819_s14, 128  ;;  %s713_s9 = smov [#allocation2]  }
  0x21   : > { %p631_p2 = scmp.ne.s32.totalorder %s819_s14, %s630_s7  ;;  %s635_s10 = sshll.u32 %s713_s9, 4  ;;  %s636_s10 = int_to_ptr.vmem [resolvable:$false] %s635_s10 }
  0x22   : > { %s637_s11 = scalar_lea.vmem %s636_s10, 256  ;;  %p638_p11 = scmp.lt.s32.totalorder %s819_s14, %s636_s10 }
  0x23   : > { %p633_p4 = pnand %p631_p2, %p617_p3  ;;  %p639_p5 = scmp.lt.s32.totalorder %s637_s11, %s630_s7 }
  0x25   : > { %p634_p12 = pneg %p633_p4  ;;  %p640_p8 = por %p639_p5, %p638_p11 }
  0x27   : > { %p641_p9 = pnand %p640_p8, %p634_p12 }
  0x29   : > { %644 = shalt.err (!%p641_p9)
}
  0x2a   : > { %568 = dma.hbm_to_vmem [thread:$0]  (!%p815_p13), %s811_s12, 128, %s819_s14, %s188_s16  }
  0x2b   : > { %p937_p0 = scmp.lt.s32.totalorder %s711_s21, 3  ;;  %p938_p1 = scmp.ge.s32.totalorder %s711_s21, 1 }
  0x2d   : > { %p205_p3 = pnand %p938_p1, %p937_p0 }
  0x2e   : > { %s853_s13 = sand.u32 (!%p205_p3), 1, %s703_s19  }
  0x2f   : > { %208 = sbr.rel (%p205_p3) target bundleno = 798 (0x31e), region = 40  ;;  %s533_s17 = sshll.u32 (!%p205_p3), %s853_s13, 3 }
  0x30   : > { %s211_s23 = scalar_lea.sflag (!%p205_p3), [#allocation3], %s853_s13  ;;  %s214_s15 = scalar_lea.vmem (!%p205_p3), [#allocation2], %s533_s17 }
  0x36   : > { %690 = dma.done.wait (%p791_p6), %s211_s23, 128  }
  0x37   : > { %692 = vsyncadd (%p791_p6), %s211_s23, 4294967168  ;;  %vm245_vm0 = vcmask 1043456   ;;  %v241_v0 = vld [vmem:[%s214_s15] sm:$0xff]  ;;  %v714_v5 = vmov 0.0   ;;  %vm261_vm1 = vcmask 31744   ;;  %vm715_vm2 = vmmov 0  }
  0x38   : > { %v243_v1 = vcombine.high %v241_v0, %v241_v0  ;;  %v246_v2 = vsel %vm245_vm0, %v241_v0, 0.0  ;;  %551 = vmatprep.subr.mxu0 %v714_v5  ;;  %v252_v6 = vld [vmem:[%s926_s1] sm:$0x3]  ;;  %556 = vmatprep.subr.mxu1 %v714_v5  ;;  %v255_v7 = vlaneseq  ;;  %vm340_vm3 = vcmask 15360   ;;  %s546_s7 = sshll.u32 %s769_s22, 7  ;;  %s240_s9 = scalar_lea.vmem [#allocation5], %s533_s17 }
  0x39   : > { %552 = vmatpush3.xpose.msk.msra.mxu0 %vm261_vm1, %v252_v6  ;;  %553 = vmatprep.mubr.msk.f32.mxu0 %vm715_vm2, %v714_v5  ;;  %v338_v14 = vld [vmem:[%s928_s3] sm:$0xf]  ;;  %v716_v30 = vmov 839922192   ;;  %s456_s10 = sshll.u32 %s240_s9, 4  ;;  %s881_s15 = scalar_lea.hbm %s930_s5, %s546_s7  ;;  %s883_s10 = int_to_ptr.vmem [resolvable:$true] %s456_s10 }
  0x3a   : > { %v247_v3 = vsel %vm245_vm0, %v243_v1, 0.0  ;;  %558 = vmatprep.mubr.msk.f32.mxu1 %vm715_vm2, %v714_v5  ;;  %v256_v8 = vand.u32 127, %v255_v7  ;;  %v258_v9 = vshrl.u32 %v255_v7, 7  ;;  %557 = vmatpush3.xpose.msk.msra.mxu1 %vm340_vm3, %v338_v14  ;;  %v253_v15 = vld [vmem:[%s927_s2] sm:$0x1]  ;;  %v432_v31 = vunpack.c.l.s4 %v716_v30  ;;  %s442_s12 = scalar_lea.sflag [#allocation4], %s853_s13 }
  0x3b   : > { %v248_v4 = vadd.f32 %v247_v3, %v246_v2  ;;  %v339_v20 = vld [vmem:[%s929_s4] sm:$0x1]  ;;  %s645_s14 = scalar_lea.vmem %s883_s10, 128  ;;  %p939_p11 = scmp.ne.s32.totalorder %s934_s30, 0 }
  0x3c   : > { %v259_v10 = vsub.s32 %v256_v8, %v258_v9  ;;  %v425_v27 = vsub.s32 0, %v258_v9  ;;  %v433_v32 = vunpack.c.0.s8 %v432_v31  ;;  %p646_p6 = scmp.ne.s32.totalorder %s883_s10, %s645_s14  ;;  %s717_s22 = smov [#allocation5]  }
  0x3d   : > { %249 = vadd.xlane.f32.xlu0 %v248_v4  ;;  %s649_s17 = sshll.u32 %s717_s22, 4  ;;  %s650_s17 = int_to_ptr.vmem [resolvable:$false] %s649_s17 }
  0x3e   : > { %v436_v33 = vsub.s32 %v433_v32, %v258_v9  ;;  %p647_p12 = pnand %p646_p6, %p939_p11  ;;  %s651_s29 = scalar_lea.vmem %s650_s17, 256 }
  0x3f   : > { %p652_p7 = scmp.lt.s32.totalorder %s883_s10, %s650_s17  ;;  %p653_p10 = scmp.lt.s32.totalorder %s651_s29, %s645_s14 }
  0x40   : > { %p648_p13 = pneg %p647_p12 }
  0x41   : > { %p654_p2 = por %p653_p10, %p652_p7 }
  0x43   : > { %p655_p4 = pnand %p654_p2, %p648_p13 }
  0xca   : > { %v250_v11 = vpop.xlane.xlu0 %249 }
  0xcb   : > { %v251_v12 = vmul.f32 0.00390625, %v250_v11 }
  0xcd   : > { %v260_v13 = vrot.slane %v251_v12, %v259_v10 }
  0xcf   : > { %554 = vmatmul.mubr.msk.f32.vlgmr.msra.gmra.mrb[0].mxu0 %vm261_vm1, %v260_v13 }
 0x1a2   : > { %v333_v16 = vpop.f32.mrb[0].mxu0 }
 0x1a3   : > { %v334_v17 = vadd.f32 %v333_v16, %v253_v15  ;;  %v555_v18 = vpop.f32.mrb[1].mxu0 }
 0x1a5   : > { %v337_v19 = vmax.f32 %v334_v17, 0.0 }
 0x1a7   : > { %559 = vmatmul.mubr.msk.f32.vlgmr.msra.gmra.mrb[0].mxu1 %vm340_vm3, %v337_v19 }
 0x27a   : > { %v413_v21 = vpop.f32.mrb[0].mxu1 }
 0x27b   : > { %v414_v22 = vadd.f32 %v413_v21, %v339_v20  ;;  %v560_v23 = vpop.f32.mrb[1].mxu1 }
 0x27d   : > { %v539_v24 = vmul.f32 -1.442695, %v414_v22 }
 0x27f   : > { %611 = vpow2.f32 %v539_v24 }
 0x289   : > { %v612_v25 = vpop.eup %611 }
 0x28a   : > { %v420_v26 = vadd.f32 1.0, %v612_v25 }
 0x28c   : > { %613 = vrcp.f32 %v420_v26 }
 0x296   : > { %v614_v28 = vpop.eup %613 }
 0x297   : > { %v426_v29 = vrot.slane %v614_v28, %v425_v27 }
 0x299   : > { %428 = vbcast.lane.b32.xlu0 %v426_v29, 256 }
 0x30b   : > { %v429_v34 = vpop.permute.xlu0 %428 }
 0x30c   : > { %v437_v35 = vrot.slane %v429_v34, %v436_v33 }
 0x30e   : > { %v439_v36 = vmul.f32 %v437_v35, %v241_v0 }
 0x310   : > { %440 = vst [vmem:[%s240_s9] sm:$0xff] %v439_v36 }
 0x311   : > { %658 = shalt.err (!%p655_p4)
}
 0x312   : > { %s659_s13 = scalar_lea.hbm %s881_s15, 128  ;;  %s663_s26 = scalar_lea.hbm %s930_s5, 256 }
 0x313   : > { %p660_p5 = scmp.ne.s32.totalorder %s881_s15, %s659_s13  ;;  %p664_p0 = scmp.lt.u32.totalorder %s881_s15, %s930_s5 }
 0x314   : > { %p665_p1 = scmp.lt.u32.totalorder %s663_s26, %s659_s13  ;;  %p667_p6 = scmp.lt.u32.totalorder %s659_s13, %s881_s15 }
 0x315   : > { %p661_p8 = pnand %p660_p5, %p939_p11 }
 0x316   : > { %p666_p3 = por %p665_p1, %p664_p0 }
 0x317   : > { %p662_p9 = pneg %p661_p8 }
 0x318   : > { %p668_p12 = por %p667_p6, %p666_p3 }
 0x31a   : > { %p669_p13 = pnand %p668_p12, %p662_p9 }
 0x31c   : > { %672 = shalt.err (!%p669_p13)
}
 0x31d   : > { %563 = dma.vmem_to_hbm [thread:$0]  (%p939_p11), %s883_s10, 128, %s881_s15, %s442_s12  }
 0x31e PF: > { %s468_s7 = sand.u32 1, %s699_s18   ;;  %p940_p7 = scmp.ne.s32.totalorder %s935_s6, 0 }
 0x31f   : > { %p941_p10 = scmp.ge.s32.totalorder %s711_s21, 2  ;;  %s469_s9 = scalar_lea.sflag [#allocation4], %s468_s7 }
 0x321   : > { %p570_p2 = pnand %p941_p10, %p940_p7 }
 0x323   : > { %694 = dma.done.wait (!%p570_p2), %s469_s9, 128  }
 0x324   : > { %696 = vsyncadd (!%p570_p2), %s469_s9, 4294967168  ;;  %p18_p4 = scmp.ge.s32.totalorder %s773_s24, 4   ;;  %s942_s18 = smov %s703_s19 }
 0x325   : > { %s943_s19 = smov %s707_s20  ;;  %s944_s20 = smov %s785_s27 }
 0x326   : > { %s945_s21 = smov %s773_s24  ;;  %20 = sbr.rel (!%p18_p4) target bundleno = 5 (0x5), region = 85 }
 0x32d   :  { %474 = vsyncpa [#allocation3], 1 }
 0x32e   :  { %476 = vsyncpa [#allocation3 + $0x1], 1 }
 0x32f   :  { %477 = vsyncpa [#allocation4], 1 }
 0x330   :  { %479 = vsyncpa [#allocation4 + $0x1], 1 }

</bundles_post_ra>
